<compile_context>
chip_gen: v5e
topology: v5e:2x2
jax: 0.10.0
libtpu: 0.0.40
codegen_flags: <defaults>
</compile_context>

<pallas_src>
import functools
import math

import jax
import jax.numpy as jnp
from jax import lax
from jax.experimental import pallas as pl
from jax.experimental.pallas import tpu as pltpu


def _round_up(x, m):
    return ((x + m - 1) // m) * m


def _default_head_config():
    """Per-TPU-generation tile / VMEM-limit defaults.

    v6e (128 MiB VMEM, highest bf16 roofline crossover) benefits most from big
    row tiles; v5e (128 MiB) already reaches its compute roofline at tm=512 on
    the loss-only path; v7x has only 64 MiB VMEM per TensorCore so the budget
    is capped at ~48 MiB.
    """
    try:
        kind = jax.devices()[0].device_kind.lower()
    except Exception:  # no device visible — fall back to the conservative case
        kind = ""
    if "v6" in kind:
        return dict(row_tile=1024, vocab_tile=4096,
                    vmem_limit_bytes=96 * 1024 * 1024)
    if "v5" in kind:
        return dict(row_tile=512, vocab_tile=4096,
                    vmem_limit_bytes=64 * 1024 * 1024)
    # v7x or unknown: assume the smaller 64 MiB VMEM.
    return dict(row_tile=512, vocab_tile=2048,
                vmem_limit_bytes=48 * 1024 * 1024)


# ---------------------------------------------------------------------------
# Fused kernel: VLMapper projection + lm-head + online-logsumexp token NLL
#   grid = (row_tiles [parallel], vocab_tiles [arbitrary])
# ---------------------------------------------------------------------------
def _fused_head_kernel(x_ref, wmap_ref, bmap_ref, wv_ref, lbl_ref,   # inputs
                       *refs,                                        # outs+scratch
                       vocab_size, vocab_tile, vocab_padded, emit_logits):
    if emit_logits:
        mapped_ref, logits_ref, nll_ref, m_sc, l_sc, lab_sc = refs
    else:
        mapped_ref, nll_ref, m_sc, l_sc, lab_sc = refs
        logits_ref = None

    j = pl.program_id(1)
    n_vocab = pl.num_programs(1)

    # --- per row-tile init: VLMapper relu(x @ Wmap + b) + online-LSE state ---
    @pl.when(j == 0)
    def _():
        h = jnp.dot(x_ref[...], wmap_ref[...],
                    preferred_element_type=jnp.float32)      # bf16 MXU, f32 acc
        h = jnp.maximum(h + bmap_ref[...], 0.0)
        mapped_ref[...] = h.astype(mapped_ref.dtype)         # bf16, resident over j
        m_sc[...] = jnp.full_like(m_sc, -1e30)
        l_sc[...] = jnp.zeros_like(l_sc)
        lab_sc[...] = jnp.zeros_like(lab_sc)

    # --- lm-head vocab tile: logits = (emb * sqrt(H)) @ Wv (scale folded) ----
    logits = jnp.dot(mapped_ref[...], wv_ref[...],
                     preferred_element_type=jnp.float32)      # (tm, tv) f32

    col = lax.broadcasted_iota(jnp.int32, logits.shape, 1) + j * vocab_tile
    if vocab_padded:  # static branch: only the last tile can contain padding
        logits = jnp.where(col < vocab_size, logits, -1e30)

    if emit_logits:
        logits_ref[...] = logits.astype(logits_ref.dtype)     # bf16 lane-dense tile

    # --- online logsumexp (running-max rescale) ------------------------------
    m_prev = m_sc[...]
    m_new = jnp.maximum(m_prev, jnp.max(logits, axis=-1, keepdims=True))
    alpha = jnp.exp(m_prev - m_new)
    l_sc[...] = alpha * l_sc[...] + jnp.sum(jnp.exp(logits - m_new),
                                            axis=-1, keepdims=True)
    m_sc[...] = m_new

    # --- label-logit gather: exactly one vocab tile matches each row's label -
    lab_sc[...] = lab_sc[...] + jnp.sum(
        jnp.where(col == lbl_ref[...], logits, 0.0), axis=-1, keepdims=True)

    # --- finalize: nll = logsumexp - label_logit ------------------------------
    @pl.when(j == n_vocab - 1)
    def _():
        nll_ref[...] = m_sc[...] + jnp.log(l_sc[...]) - lab_sc[...]


def fused_vl_translation_head(x_flat, w_map, b_map, w_vocab_padded, labels, *,
                              vocab_size, row_tile, vocab_tile,
                              emit_logits=False, logits_dtype=jnp.bfloat16,
                              vmem_limit_bytes=48 * 1024 * 1024):
    """Fused VLMapper + lm-head + online-logsumexp token NLL.

    x_flat         : [BT, Cin] float
    w_map          : [Cin, H]  bf16
    b_map          : [1,  H]   f32
    w_vocab_padded : [H, V_pad] bf16, pre-scaled by sqrt(H), V_pad % vocab_tile == 0
    labels         : [BT] int32 (already clamped to [0, vocab_size))
    Returns (mapped [BT,H] bf16, [logits [BT,V] bf16,] nll [BT] f32).
    """
    BT, Cin = x_flat.shape
    H, V_pad = w_vocab_padded.shape

    # Row tile: multiple of 8 sublanes, as large as the config allows; keep
    # >= 2 row tiles whenever BT allows so the "parallel" axis can split across
    # v7x's two TensorCores.
    tm = min(row_tile, _round_up(BT, 8))
    if BT > 8 and _round_up(BT, tm) // tm < 2:
        tm = max(8, _round_up((BT + 1) // 2, 8))
    BT_pad = _round_up(BT, tm)

    # Vocab tile: multiple of 128 lanes; w_vocab is already padded to it.
    tv = min(vocab_tile, V_pad)
    assert V_pad % tv == 0, (V_pad, tv)
    vocab_is_padded = V_pad != vocab_size

    x_p = jnp.zeros((BT_pad, Cin), jnp.bfloat16).at[:BT].set(
        x_flat.astype(jnp.bfloat16))
    lbl_p = jnp.zeros((BT_pad, 1), jnp.int32).at[:BT, 0].set(
        labels.astype(jnp.int32))

    grid = (BT_pad // tm, V_pad // tv)

    kernel = functools.partial(_fused_head_kernel,
                               vocab_size=vocab_size, vocab_tile=tv,
                               vocab_padded=vocab_is_padded,
                               emit_logits=emit_logits)

    out_shape = [jax.ShapeDtypeStruct((BT_pad, H), jnp.bfloat16)]       # mapped
    out_specs = [pl.BlockSpec((tm, H), lambda i, j: (i, 0))]            # resident over j
    if emit_logits:
        out_shape.append(jax.ShapeDtypeStruct((BT_pad, V_pad), logits_dtype))
        out_specs.append(pl.BlockSpec((tm, tv), lambda i, j: (i, j)))   # lane-dense tile
    out_shape.append(jax.ShapeDtypeStruct((BT_pad, 1), jnp.float32))    # per-token nll
    out_specs.append(pl.BlockSpec((tm, 1), lambda i, j: (i, 0)))        # resident over j

    outs = pl.pallas_call(
        kernel,
        out_shape=tuple(out_shape),
        grid_spec=pltpu.PrefetchScalarGridSpec(
            num_scalar_prefetch=0,
            grid=grid,
            in_specs=[
                pl.BlockSpec((tm, Cin), lambda i, j: (i, 0)),   # x rows
                pl.BlockSpec((Cin, H), lambda i, j: (0, 0)),    # W_map (resident)
                pl.BlockSpec((1, H), lambda i, j: (0, 0)),      # b_map (resident)
                pl.BlockSpec((H, tv), lambda i, j: (0, j)),     # W_vocab tile (streamed)
                pl.BlockSpec((tm, 1), lambda i, j: (i, 0)),     # labels
            ],
            out_specs=tuple(out_specs),
            scratch_shapes=[
                pltpu.VMEM((tm, 1), jnp.float32),    # running max m
                pltpu.VMEM((tm, 1), jnp.float32),    # running sum l
                pltpu.VMEM((tm, 1), jnp.float32),    # label-logit accumulator
            ],
        ),
        compiler_params=pltpu.CompilerParams(
            dimension_semantics=("parallel", "arbitrary"),
            vmem_limit_bytes=vmem_limit_bytes,
        ),
    )(x_p, w_map, b_map, w_vocab_padded, lbl_p)

    if emit_logits:
        mapped, logits, nll = outs
        return mapped[:BT], logits[:BT, :vocab_size], nll[:BT, 0]
    mapped, nll = outs
    return mapped[:BT], nll[:BT, 0]


# ---------------------------------------------------------------------------
# SignLanguageModel forward (task='S2T_glsfree', input_data='feature')
# ---------------------------------------------------------------------------
class SignLanguageModelPallas:
    def __init__(self, in_features, hidden, vocab, key, *,
                 row_tile=None, vocab_tile=None, vmem_limit_bytes=None):
        cfg = _default_head_config()
        self.row_tile = int(row_tile or cfg["row_tile"])
        vocab_tile = int(vocab_tile or cfg["vocab_tile"])
        self.vmem_limit_bytes = int(vmem_limit_bytes or cfg["vmem_limit_bytes"])

        k1, k2 = jax.random.split(key, 2)
        w_map = (jax.random.normal(k1, (in_features, hidden), jnp.float32)
                 * (1.0 / math.sqrt(in_features)))
        w_vocab = (jax.random.normal(k2, (hidden, vocab), jnp.float32)
                   * (1.0 / math.sqrt(hidden)))

        # bf16 weights feed the MXU at native rate; f32 accumulation in-kernel.
        self.w_map = w_map.astype(jnp.bfloat16)
        self.b_map = jnp.zeros((1, hidden), jnp.float32)

        # mBART scales input embeds by sqrt(d_model) before the lm_head; fold
        # that constant into the vocab projection and pre-pad the vocab axis to
        # the tile multiple ONCE here (no per-forward pad / HBM round-trip).
        tv = min(vocab_tile, _round_up(vocab, 128))
        v_pad = _round_up(vocab, tv)
        wv = (w_vocab * math.sqrt(hidden)).astype(jnp.bfloat16)
        if v_pad != vocab:
            wv = jnp.pad(wv, ((0, 0), (0, v_pad - vocab)))
        self.w_vocab_padded = wv
        self.vocab_tile = tv

        self.in_features = in_features
        self.hidden = hidden
        self.vocab = vocab

    def forward(self, sgn_features, sgn_lengths, labels, *, need_logits=False):
        """
        sgn_features : [B, T, Cin] float32  (recognition_inputs['sgn_features'])
        sgn_lengths  : [B]         int32    (recognition_inputs['sgn_lengths'])
        labels       : [B, T]      int32    (translation targets for the loss)
        need_logits  : also materialize the full [B, T, V] logits (skipped on
                       the training / loss-only path to halve HBM traffic).
        """
        B, T, Cin = sgn_features.shape
        x_flat = sgn_features.reshape(B * T, Cin)
        # Clamp so an out-of-range label cannot silently zero the label logit.
        labels_flat = jnp.clip(labels.reshape(B * T).astype(jnp.int32),
                               0, self.vocab - 1)

        outs = fused_vl_translation_head(
            x_flat, self.w_map, self.b_map, self.w_vocab_padded, labels_flat,
            vocab_size=self.vocab, row_tile=self.row_tile,
            vocab_tile=self.vocab_tile, emit_logits=need_logits,
            vmem_limit_bytes=self.vmem_limit_bytes)

        if need_logits:
            mapped_flat, logits_flat, nll = outs
        else:
            mapped_flat, nll = outs
            logits_flat = None

        mapped_feature = mapped_flat.reshape(B, T, self.hidden)

        # mask padding positions using sgn_lengths (plain-JAX glue)
        pos = jnp.arange(T)[None, :]
        valid = (pos < sgn_lengths[:, None]).astype(jnp.float32)
        nll_bt = nll.reshape(B, T)
        translation_loss = (jnp.sum(nll_bt * valid)
                            / jnp.maximum(jnp.sum(valid), 1.0))

        model_outputs = {
            "transformer_inputs": {
                "input_feature": mapped_feature,   # bf16; downstream consumes bf16
                "input_lengths": sgn_lengths,
            },
            "translation_loss": translation_loss,
            "total_loss": translation_loss,   # S2T_glsfree: total == translation
        }
        if need_logits:
            model_outputs["logits"] = logits_flat.reshape(B, T, self.vocab)
        return model_outputs


if __name__ == "__main__":
    # Small shapes consistent with the forward: batch=2, seq=8, in_feature=64,
    # translation hidden=128, vocab=256.  Tiles are shrunk (8 / 128) so the demo
    # exercises a real (2 row-tiles x 2 vocab-tiles) grid, the online-logsumexp
    # init/finalize paths, and both the loss-only and with-logits variants.
    B, T, Cin, H, V = 2, 8, 64, 128, 256
    key = jax.random.PRNGKey(0)
    k_feat, k_lab, k_param = jax.random.split(key, 3)

    sgn_features = jax.random.normal(k_feat, (B, T, Cin), jnp.float32)
    sgn_lengths = jnp.array([T, T - 2], dtype=jnp.int32)
    labels = jax.random.randint(k_lab, (B, T), 0, V, dtype=jnp.int32)

    model = SignLanguageModelPallas(Cin, H, V, k_param,
                                    row_tile=8, vocab_tile=128)

    # training / loss-only path (no full-logits writeback)
    outputs = model.forward(sgn_features, sgn_lengths, labels)
    jax.block_until_ready(outputs["total_loss"])
    jax.block_until_ready(outputs["transformer_inputs"]["input_feature"])

    assert outputs["transformer_inputs"]["input_feature"].shape == (B, T, H)
    assert outputs["total_loss"].shape == ()
    assert "logits" not in outputs

    # evaluation path that also materializes logits
    outputs_l = model.forward(sgn_features, sgn_lengths, labels,
                              need_logits=True)
    jax.block_until_ready(outputs_l["logits"])
    assert outputs_l["logits"].shape == (B, T, V)

    # pure-JAX reference with the same bf16 weights (sanity check)
    xb = sgn_features.reshape(B * T, Cin).astype(jnp.bfloat16)
    mapped_f32 = jnp.maximum(
        jnp.dot(xb, model.w_map, preferred_element_type=jnp.float32)
        + model.b_map, 0.0)
    mapped_ref = mapped_f32.astype(jnp.bfloat16)
    logits_ref = jnp.dot(mapped_ref, model.w_vocab_padded[:, :V],
                         preferred_element_type=jnp.float32)
    lse = jax.scipy.special.logsumexp(logits_ref, axis=-1)
    lab = jnp.take_along_axis(logits_ref, labels.reshape(-1, 1), axis=-1)[:, 0]
    nll_ref = (lse - lab).reshape(B, T)
    valid = (jnp.arange(T)[None, :] < sgn_lengths[:, None]).astype(jnp.float32)
    loss_ref = jnp.sum(nll_ref * valid) / jnp.maximum(jnp.sum(valid), 1.0)

    assert bool(jnp.allclose(outputs["total_loss"], loss_ref,
                             rtol=2e-2, atol=2e-2))
    assert bool(jnp.allclose(outputs_l["total_loss"], loss_ref,
                             rtol=2e-2, atol=2e-2))
    assert bool(jnp.allclose(
        outputs["transformer_inputs"]["input_feature"].astype(jnp.float32),
        mapped_ref.reshape(B, T, H).astype(jnp.float32),
        rtol=2e-2, atol=2e-2))
    assert bool(jnp.allclose(
        outputs_l["logits"].astype(jnp.float32),
        logits_ref.astype(jnp.bfloat16).astype(jnp.float32).reshape(B, T, V),
        rtol=2e-2, atol=2e-2))
    print("KERNEL_OK")
</pallas_src>

<mosaic_0001>
module attributes {stable_mosaic.version = 11 : i64} {
  func.func @_fused_head_kernel(%arg0: i32, %arg1: i32, %arg2: memref<8x64xbf16, #tpu.memory_space<vmem>>, %arg3: memref<64x128xbf16, #tpu.memory_space<vmem>>, %arg4: memref<1x128xf32, #tpu.memory_space<vmem>>, %arg5: memref<128x128xbf16, #tpu.memory_space<vmem>>, %arg6: memref<8x1xi32, #tpu.memory_space<vmem>>, %arg7: memref<8x128xbf16, #tpu.memory_space<vmem>>, %arg8: memref<8x1xf32, #tpu.memory_space<vmem>>, %arg9: memref<8x1xf32, #tpu.memory_space<vmem>>, %arg10: memref<8x1xf32, #tpu.memory_space<vmem>>, %arg11: memref<8x1xf32, #tpu.memory_space<vmem>>) attributes {dimension_semantics = [#tpu.dimension_semantics<parallel>, #tpu.dimension_semantics<arbitrary>], iteration_bounds = array<i64: 2, 2>, scalar_prefetch = 0 : i64, scratch_operands = 3 : i64, tpu.core_type = #tpu.core_type<tc>, window_params = [{transform_indices = @transform_0, window_bounds = array<i64: 8, 64>}, {pipeline_mode = #tpu.pipeline_mode<synchronous>, transform_indices = @transform_1, window_bounds = array<i64: 64, 128>}, {pipeline_mode = #tpu.pipeline_mode<synchronous>, transform_indices = @transform_2, window_bounds = array<i64: 1, 128>}, {transform_indices = @transform_3, window_bounds = array<i64: 128, 128>}, {transform_indices = @transform_4, window_bounds = array<i64: 8, 1>}, {transform_indices = @transform_5, window_bounds = array<i64: 8, 128>}, {transform_indices = @transform_6, window_bounds = array<i64: 8, 1>}]} {
    %c0_i32 = arith.constant 0 : i32
    %0 = arith.cmpi eq, %arg1, %c0_i32 : i32
    %1 = arith.extui %0 : i1 to i32
    %c0_i32_0 = arith.constant 0 : i32
    %2 = arith.cmpi ne, %1, %c0_i32_0 : i32
    scf.if %2 {
      %c0_23 = arith.constant 0 : index
      %c0_24 = arith.constant 0 : index
      %39 = vector.load %arg2[%c0_23, %c0_24] : memref<8x64xbf16, #tpu.memory_space<vmem>>, vector<8x64xbf16>
      %c0_25 = arith.constant 0 : index
      %c0_26 = arith.constant 0 : index
      %40 = vector.load %arg3[%c0_25, %c0_26] : memref<64x128xbf16, #tpu.memory_space<vmem>>, vector<64x128xbf16>
      %cst_27 = arith.constant dense<0.000000e+00> : vector<8x128xf32>
      %41 = tpu.matmul %39, %40, %cst_27 {dimension_numbers = #tpu.dot_dimension_numbers<[1], [0], [0], [1], [0, 0, 1, 1], [], []>} : vector<8x64xbf16>, vector<64x128xbf16>, vector<8x128xf32> -> vector<8x128xf32>
      %c0_28 = arith.constant 0 : index
      %c0_29 = arith.constant 0 : index
      %42 = vector.load %arg4[%c0_28, %c0_29] : memref<1x128xf32, #tpu.memory_space<vmem>>, vector<1x128xf32>
      %43 = vector.broadcast %42 : vector<1x128xf32> to vector<8x128xf32>
      %44 = arith.addf %41, %43 : vector<8x128xf32>
      %cst_30 = arith.constant 0.000000e+00 : f32
      %45 = vector.broadcast %cst_30 : f32 to vector<8x128xf32>
      %46 = arith.maximumf %44, %45 : vector<8x128xf32>
      %47 = arith.truncf %46 : vector<8x128xf32> to vector<8x128xbf16>
      %c0_31 = arith.constant 0 : index
      %c0_32 = arith.constant 0 : index
      %48 = vector.load %arg7[%c0_31, %c0_32] : memref<8x128xbf16, #tpu.memory_space<vmem>>, vector<8x128xbf16>
      tpu.vector_store %arg7[%c0_31, %c0_32], %47 {strides = array<i32>} : memref<8x128xbf16, #tpu.memory_space<vmem>>, vector<8x128xbf16>,
      %cst_33 = arith.constant -1.000000e+30 : f32
      %49 = vector.broadcast %cst_33 : f32 to vector<8x1xf32>
      %c0_34 = arith.constant 0 : index
      %c0_35 = arith.constant 0 : index
      %50 = vector.load %arg9[%c0_34, %c0_35] : memref<8x1xf32, #tpu.memory_space<vmem>>, vector<8x1xf32>
      tpu.vector_store %arg9[%c0_34, %c0_35], %49 {strides = array<i32>} : memref<8x1xf32, #tpu.memory_space<vmem>>, vector<8x1xf32>,
      %cst_36 = arith.constant 0.000000e+00 : f32
      %51 = vector.broadcast %cst_36 : f32 to vector<8x1xf32>
      %c0_37 = arith.constant 0 : index
      %c0_38 = arith.constant 0 : index
      %52 = vector.load %arg10[%c0_37, %c0_38] : memref<8x1xf32, #tpu.memory_space<vmem>>, vector<8x1xf32>
      tpu.vector_store %arg10[%c0_37, %c0_38], %51 {strides = array<i32>} : memref<8x1xf32, #tpu.memory_space<vmem>>, vector<8x1xf32>,
      %cst_39 = arith.constant 0.000000e+00 : f32
      %53 = vector.broadcast %cst_39 : f32 to vector<8x1xf32>
      %c0_40 = arith.constant 0 : index
      %c0_41 = arith.constant 0 : index
      %54 = vector.load %arg11[%c0_40, %c0_41] : memref<8x1xf32, #tpu.memory_space<vmem>>, vector<8x1xf32>
      tpu.vector_store %arg11[%c0_40, %c0_41], %53 {strides = array<i32>} : memref<8x1xf32, #tpu.memory_space<vmem>>, vector<8x1xf32>,
    } else {
    }
    %c0 = arith.constant 0 : index
    %c0_1 = arith.constant 0 : index
    %3 = vector.load %arg7[%c0, %c0_1] : memref<8x128xbf16, #tpu.memory_space<vmem>>, vector<8x128xbf16>
    %c0_2 = arith.constant 0 : index
    %c0_3 = arith.constant 0 : index
    %4 = vector.load %arg5[%c0_2, %c0_3] : memref<128x128xbf16, #tpu.memory_space<vmem>>, vector<128x128xbf16>
    %cst = arith.constant dense<0.000000e+00> : vector<8x128xf32>
    %5 = tpu.matmul %3, %4, %cst {dimension_numbers = #tpu.dot_dimension_numbers<[1], [0], [0], [1], [0, 0, 1, 1], [], []>} : vector<8x128xbf16>, vector<128x128xbf16>, vector<8x128xf32> -> vector<8x128xf32>
    %6 = tpu.iota {dimensions = array<i32: 1>} : vector<8x128xi32>
    %c128_i32 = arith.constant 128 : i32
    %7 = arith.muli %arg1, %c128_i32 : i32
    %8 = vector.broadcast %7 : i32 to vector<8x128xi32>
    %9 = arith.addi %6, %8 : vector<8x128xi32>
    %c0_4 = arith.constant 0 : index
    %c0_5 = arith.constant 0 : index
    %10 = vector.load %arg9[%c0_4, %c0_5] : memref<8x1xf32, #tpu.memory_space<vmem>>, vector<8x1xf32>
    %cst_6 = arith.constant dense<0xFF800000> : vector<8xf32>
    %11 = vector.multi_reduction <maximumf>, %5, %cst_6 [1] : vector<8x128xf32> to vector<8xf32>
    %12 = vector.shape_cast %11 : vector<8xf32> to vector<8x1xf32>
    %13 = arith.maximumf %10, %12 : vector<8x1xf32>
    %14 = arith.subf %10, %13 : vector<8x1xf32>
    %15 = math.exp %14 : vector<8x1xf32>
    %c0_7 = arith.constant 0 : index
    %c0_8 = arith.constant 0 : index
    %16 = vector.load %arg10[%c0_7, %c0_8] : memref<8x1xf32, #tpu.memory_space<vmem>>, vector<8x1xf32>
    %17 = arith.mulf %15, %16 : vector<8x1xf32>
    %18 = vector.broadcast %13 : vector<8x1xf32> to vector<8x128xf32>
    %19 = arith.subf %5, %18 : vector<8x128xf32>
    %20 = math.exp %19 : vector<8x128xf32>
    %cst_9 = arith.constant dense<0.000000e+00> : vector<8xf32>
    %21 = vector.multi_reduction <add>, %20, %cst_9 [1] : vector<8x128xf32> to vector<8xf32>
    %22 = vector.shape_cast %21 : vector<8xf32> to vector<8x1xf32>
    %23 = arith.addf %17, %22 : vector<8x1xf32>
    %c0_10 = arith.constant 0 : index
    %c0_11 = arith.constant 0 : index
    %24 = vector.load %arg10[%c0_10, %c0_11] : memref<8x1xf32, #tpu.memory_space<vmem>>, vector<8x1xf32>
    tpu.vector_store %arg10[%c0_10, %c0_11], %23 {strides = array<i32>} : memref<8x1xf32, #tpu.memory_space<vmem>>, vector<8x1xf32>,
    %c0_12 = arith.constant 0 : index
    %c0_13 = arith.constant 0 : index
    %25 = vector.load %arg9[%c0_12, %c0_13] : memref<8x1xf32, #tpu.memory_space<vmem>>, vector<8x1xf32>
    tpu.vector_store %arg9[%c0_12, %c0_13], %13 {strides = array<i32>} : memref<8x1xf32, #tpu.memory_space<vmem>>, vector<8x1xf32>,
    %c0_14 = arith.constant 0 : index
    %c0_15 = arith.constant 0 : index
    %26 = vector.load %arg11[%c0_14, %c0_15] : memref<8x1xf32, #tpu.memory_space<vmem>>, vector<8x1xf32>
    %c0_16 = arith.constant 0 : index
    %c0_17 = arith.constant 0 : index
    %27 = vector.load %arg6[%c0_16, %c0_17] : memref<8x1xi32, #tpu.memory_space<vmem>>, vector<8x1xi32>
    %28 = vector.broadcast %27 : vector<8x1xi32> to vector<8x128xi32>
    %29 = arith.cmpi eq, %9, %28 : vector<8x128xi32>
    %cst_18 = arith.constant 0.000000e+00 : f32
    %30 = vector.broadcast %cst_18 : f32 to vector<8x128xf32>
    %31 = arith.select %29, %5, %30 : vector<8x128xi1>, vector<8x128xf32>
    %cst_19 = arith.constant dense<0.000000e+00> : vector<8xf32>
    %32 = vector.multi_reduction <add>, %31, %cst_19 [1] : vector<8x128xf32> to vector<8xf32>
    %33 = vector.shape_cast %32 : vector<8xf32> to vector<8x1xf32>
    %34 = arith.addf %26, %33 : vector<8x1xf32>
    %c0_20 = arith.constant 0 : index
    %c0_21 = arith.constant 0 : index
    %35 = vector.load %arg11[%c0_20, %c0_21] : memref<8x1xf32, #tpu.memory_space<vmem>>, vector<8x1xf32>
    tpu.vector_store %arg11[%c0_20, %c0_21], %34 {strides = array<i32>} : memref<8x1xf32, #tpu.memory_space<vmem>>, vector<8x1xf32>,
    %c1_i32 = arith.constant 1 : i32
    %36 = arith.cmpi eq, %arg1, %c1_i32 : i32
    %37 = arith.extui %36 : i1 to i32
    %c0_i32_22 = arith.constant 0 : i32
    %38 = arith.cmpi ne, %37, %c0_i32_22 : i32
    scf.if %38 {
      %c0_23 = arith.constant 0 : index
      %c0_24 = arith.constant 0 : index
      %39 = vector.load %arg9[%c0_23, %c0_24] : memref<8x1xf32, #tpu.memory_space<vmem>>, vector<8x1xf32>
      %c0_25 = arith.constant 0 : index
      %c0_26 = arith.constant 0 : index
      %40 = vector.load %arg10[%c0_25, %c0_26] : memref<8x1xf32, #tpu.memory_space<vmem>>, vector<8x1xf32>
      %41 = math.log %40 : vector<8x1xf32>
      %42 = arith.addf %39, %41 : vector<8x1xf32>
      %c0_27 = arith.constant 0 : index
      %c0_28 = arith.constant 0 : index
      %43 = vector.load %arg11[%c0_27, %c0_28] : memref<8x1xf32, #tpu.memory_space<vmem>>, vector<8x1xf32>
      %44 = arith.subf %42, %43 : vector<8x1xf32>
      %c0_29 = arith.constant 0 : index
      %c0_30 = arith.constant 0 : index
      %45 = vector.load %arg8[%c0_29, %c0_30] : memref<8x1xf32, #tpu.memory_space<vmem>>, vector<8x1xf32>
      tpu.vector_store %arg8[%c0_29, %c0_30], %44 {strides = array<i32>} : memref<8x1xf32, #tpu.memory_space<vmem>>, vector<8x1xf32>,
    } else {
    }
    return
  }
  func.func @transform_0(%arg0: i32, %arg1: i32) -> (i32, i32) {
    %c0_i32 = arith.constant 0 : i32
    %c0_i32_0 = arith.constant 0 : i32
    return %arg0, %c0_i32 : i32, i32
  }
  func.func @transform_1(%arg0: i32, %arg1: i32) -> (i32, i32) {
    %c0_i32 = arith.constant 0 : i32
    %c0_i32_0 = arith.constant 0 : i32
    %c0_i32_1 = arith.constant 0 : i32
    return %c0_i32, %c0_i32_0 : i32, i32
  }
  func.func @transform_2(%arg0: i32, %arg1: i32) -> (i32, i32) {
    %c0_i32 = arith.constant 0 : i32
    %c0_i32_0 = arith.constant 0 : i32
    %c0_i32_1 = arith.constant 0 : i32
    return %c0_i32, %c0_i32_0 : i32, i32
  }
  func.func @transform_3(%arg0: i32, %arg1: i32) -> (i32, i32) {
    %c0_i32 = arith.constant 0 : i32
    %c0_i32_0 = arith.constant 0 : i32
    return %c0_i32, %arg1 : i32, i32
  }
  func.func @transform_4(%arg0: i32, %arg1: i32) -> (i32, i32) {
    %c0_i32 = arith.constant 0 : i32
    %c0_i32_0 = arith.constant 0 : i32
    return %arg0, %c0_i32 : i32, i32
  }
  func.func @transform_5(%arg0: i32, %arg1: i32) -> (i32, i32) {
    %c0_i32 = arith.constant 0 : i32
    %c0_i32_0 = arith.constant 0 : i32
    return %arg0, %c0_i32 : i32, i32
  }
  func.func @transform_6(%arg0: i32, %arg1: i32) -> (i32, i32) {
    %c0_i32 = arith.constant 0 : i32
    %c0_i32_0 = arith.constant 0 : i32
    return %arg0, %c0_i32 : i32, i32
  }
}

</mosaic_0001>

<bundles_post_ra>
// kernel: tpu_custom_call.1
= control target key start
LH: loop header
LB: loop body
LE: loop exit
PB: predicated region body
PF: predicated region fallthrough
CT: control target
= control target key end

     0   :  { %s1387_s0 = inlined_call_operand.vmem [shape: bf16[16,64], index: 0, kind: input, shape index: {}]   ;;  %s1388_s1 = inlined_call_operand.hbm [shape: bf16[64,128], index: 1, kind: input, shape index: {}]   ;;  %s1389_s2 = inlined_call_operand.vmem [shape: f32[1,128], index: 2, kind: input, shape index: {}]   ;;  %s1390_s3 = inlined_call_operand.hbm [shape: bf16[128,256], index: 3, kind: input, shape index: {}]   ;;  %s1391_s4 = inlined_call_operand.vmem [shape: s32[16,1], index: 4, kind: input, shape index: {}]   ;;  %s1392_s5 = inlined_call_operand.hbm [shape: bf16[16,128], index: 5, kind: output, shape index: {0}]   ;;  %s1393_s6 = inlined_call_operand.vmem [shape: f32[16,1], index: 6, kind: output, shape index: {1}]  }
   0x1   :  { %1405 = sst [smem:[#allocation21_spill]] %s1388_s1 }
   0x2   :  { %1406 = sst [smem:[#allocation22_spill]] %s1389_s2 }
   0x3   :  { %1407 = sst [smem:[#allocation23_spill]] %s1392_s5 }
   0x4   :  { %12 = vsyncpa [#allocation6], 0 }
   0x5   :  { %13 = vsyncpa [#allocation9], 0 }
   0x6   :  { %15 = vsyncpa [#allocation9 + $0x1], 0 }
   0x7   :  { %16 = vsyncpa [#allocation7], 0 }
   0x8   :  { %18 = vsyncpa [#allocation7 + $0x1], 0  ;;  %s1144_s21 = smov 0   ;;  %s1146_s22 = smov 0  }
   0x9   :  { %s1148_s23 = smov 0   ;;  %s1150_s24 = smov 0  }
   0xa   :  { %s1152_s25 = smov 0   ;;  %s1154_s26 = smov 0  }
   0xb   :  { %s1156_s27 = smov 0   ;;  %s1158_s28 = smov 0  }
   0xc   :  { %s1160_s29 = smov 0   ;;  %s1162_s30 = smov 0  }
   0xd   :  { %s1164_s7 = smov 0  }
   0xe LB: > { %1408 = sst [smem:[#allocation14_spill]] %s1060_s21  ;;  %s704_s8 = sadd.s32 4294967295, %s1100_s7   ;;  %s1100_s7 = sphi %s1164_s7, %s24_s7   ;;  %s1096_s30 = sphi %s1162_s30, %s1434_s30   ;;  %s1092_s29 = sphi %s1160_s29, %s1442_s29   ;;  %s1088_s28 = sphi %s1158_s28, %s1432_s28   ;;  %s1084_s27 = sphi %s1156_s27, %s1441_s27   ;;  %s1080_s26 = sphi %s1154_s26, %s1440_s26   ;;  %s1076_s25 = sphi %s1152_s25, %s1439_s25   ;;  %s1072_s24 = sphi %s1150_s24, %s1438_s24   ;;  %s1068_s23 = sphi %s1148_s23, %s1437_s23   ;;  %s1064_s22 = sphi %s1146_s22, %s1436_s22   ;;  %s1060_s21 = sphi %s1144_s21, %s1435_s21  }
   0xf   : > { %1409 = sst [smem:[#allocation15_spill]] %s1084_s27  ;;  %s705_s9 = sadd.s32 4294967294, %s1100_s7  }
  0x10   : > { %1410 = sst [smem:[#allocation16_spill]] %s1096_s30  ;;  %p124_p0 = scmp.ne.s32.totalorder %s1076_s25, %s1072_s24 }
  0x11   : > { %p1200_p1 = scmp.eq.s32.totalorder %s704_s8, 0  ;;  %p173_p2 = scmp.ne.s32.totalorder %s1068_s23, %s1064_s22 }
  0x12   : > { %p174_p4 = scmp.eq.s32.totalorder %s704_s8, 3  ;;  %p179_p5 = scmp.ne.s32.totalorder %s1064_s22, %s1060_s21 }
  0x13   : > { %p1209_p3 = por %p1200_p1, %p124_p0  ;;  %p180_p6 = scmp.eq.s32.totalorder %s705_s9, 3 }
  0x14   : > { %p1215_p7 = por %p174_p4, %p173_p2  ;;  %p706_p8 = scmp.ge.s32.totalorder %s1100_s7, 1 }
  0x15   : > { %p1220_p9 = por %p180_p6, %p179_p5  ;;  %p213_p10 = scmp.lt.s32.totalorder %s1100_s7, 5 }
  0x16   : > { %s1413_s13 = scalar_select %p1215_p7, 1, 0 }
  0x17   : > { %s1415_s14 = scalar_select %p1220_p9, 1, 0 }
  0x18   : > { %1414 = sst [smem:[#allocation17_spill]] %s1413_s13  ;;  %p1228_p11 = pnand %p706_p8, %p213_p10 }
  0x19   : > { %1416 = sst [smem:[#allocation18_spill]] %s1415_s14  ;;  %s1102_s19 = smov [#allocation5]  }
  0x1a   : > { %s1417_s1 = sld [smem:[#allocation21_spill]]  ;;  %p794_p12 = pneg %p1228_p11 }
  0x1b   : > { %s226_s20 = sshll.u32 %s1102_s19, 4  ;;  %s1394_s24 = smov 64   ;;  %s227_s20 = int_to_ptr.vmem [resolvable:$true] %s226_s20 }
  0x1c   : > { %p795_p13 = pnand %p794_p12, %p1200_p1  ;;  %s1395_s8 = smov 4  }
  0x1d   : > { %s33_s9 = sadd.s32 1, %s1092_s29  ;;  %s36_s15 = sadd.s32 1, %s1096_s30 }
  0x1e   : > { %p34_p0 = scmp.ge.s32.totalorder %s33_s9, 2  ;;  %s111_s16 = sadd.s32 1, %s1080_s26 }
  0x1f   : > { %p118_p2 = scmp.ne.s32.totalorder %s1080_s26, %s1076_s25  ;;  %p119_p4 = scmp.eq.s32.totalorder %s1100_s7, 0 }
  0x20   : > { %s224_s17 = sshll.u32 %s1417_s1, 4  ;;  %s1444_s9 = smov (%p34_p0, %s33_s9), 0  ;;  %s225_s17 = int_to_ptr.hbm [resolvable:$true] %s224_s17 }
  0x21   : > { %797 = dma.hbm_to_vmem [thread:$0]  (!%p795_p13), %s225_s17, 512, %s227_s20, [#allocation6], %s1394_s24, %s1394_s24, %s1395_s8  }
  0x22   : > { %1419 = sst [smem:[#allocation19_spill]] %s1444_s9  ;;  %s1446_s15 = smov (!%p34_p0, %s36_s15), %s1096_s30 }
  0x23   : > { %s108_s19 = ssub.s32 %s1092_s29, %s1444_s9  ;;  %p38_p5 = scmp.ge.s32.totalorder %s1446_s15, 2 }
  0x24   : > { %p109_p6 = scmp.eq.s32.totalorder %s108_s19, 0  ;;  %p1250_p8 = por %p119_p4, %p118_p2 }
  0x25   : > { %p807_p10 = scmp.lt.s32.totalorder %s1100_s7, 4  ;;  %s1448_s15 = smov (%p38_p5, %s1446_s15), 0 }
  0x26   : > { %1421 = sst [smem:[#allocation20_spill]] %s1448_s15  ;;  %s160_s24 = ssub.s32 %s1096_s30, %s1448_s15 }
  0x27   : > { %s1258_s20 = scalar_select %p109_p6, %s1080_s26, %s111_s16  }
  0x28   : > { %s250_s8 = sand.u32 1, %s1080_s26   ;;  %p161_p12 = scmp.eq.s32.totalorder %s160_s24, 0 }
  0x29   : > { %s709_s11 = sshll.u32 %s250_s8, 6  ;;  %s710_s1 = sshll.u32 %s1092_s29, 2 }
  0x2a   : > { %s1422_s9 = sadd.s32 1, %s1068_s23  ;;  %s258_s5 = scalar_lea.hbm %s1390_s3, %s710_s1 }
  0x2b   : > { %s1267_s14 = scalar_select %p161_p12, %s1068_s23, %s1422_s9  }
  0x2c   : > { %s259_s13 = sshll.u32 %s258_s5, 4  ;;  %s254_s2 = scalar_lea.vmem [#allocation8], %s709_s11  ;;  %s260_s13 = int_to_ptr.hbm [resolvable:$true] %s259_s13 }
  0x2d   : > { %s261_s27 = sshll.u32 %s254_s2, 4  ;;  %p799_p13 = pnand %p807_p10, %p1250_p8  ;;  %s262_s27 = int_to_ptr.vmem [resolvable:$true] %s261_s27 }
  0x2e   : > { %s251_s16 = scalar_lea.sflag [#allocation9], %s250_s8  ;;  %s1105_s15 = smov 128  }
  0x2f   : > { %s1423_s24 = smov 4   ;;  %s1424_s30 = smov 64  }
  0x30   : > { %801 = dma.hbm_to_vmem [thread:$0]  (!%p799_p13), %s260_s13, 1024, %s262_s27, %s251_s16, %s1105_s15, %s1424_s30, %s1423_s24  }
  0x31   : > { %280 = sbr.rel (%p1228_p11) target bundleno = 785 (0x311), region = 40 }
  0x36   : > { %1047 = dma.done.wait (%p1200_p1), [#allocation6], 512  }
  0x37   : > { %1049 = vsyncadd (%p1200_p1), [#allocation6], 4294966784  ;;  %s287_s1 = sand.u32 1, %s1076_s25  }
  0x38   : > { %s713_s2 = sshll.u32 %s287_s1, 6  ;;  %s288_s5 = scalar_lea.sflag [#allocation9], %s287_s1 }
  0x39   : > { %s1285_s21 = scalar_lea.vmem [#allocation8], %s713_s2 }
  0x3a   : > { %1051 = dma.done.wait (%p1209_p3), %s288_s5, 1024  }
  0x3b   : > { %1053 = vsyncadd (%p1209_p3), %s288_s5, 4294966272  ;;  %s324_s27 = sand.u32 1, %s1064_s22   ;;  %p333_p11 = scmp.lt.s32.totalorder %s1088_s28, 1 }
  0x3c   : > { %s714_s30 = sshll.u32 %s324_s27, 2  ;;  %s1425_s2 = sld [smem:[#allocation15_spill]] }
  0x3d   : > { %s334_s10 = scalar_select %p333_p11, %s1088_s28, 1 }
  0x3e   : > { %s1309_s1 = scalar_lea.vmem [#allocation10], %s714_s30 }
  0x3f   : > { %s715_s11 = sshll.u32 %s334_s10, 2  ;;  %s716_s13 = sshll.u32 %s334_s10, 3 }
  0x40   : > { %s336_s9 = scalar_lea.vmem %s1387_s0, %s715_s11  ;;  %s1302_s12 = scalar_lea.vmem %s1391_s4, %s716_s13 }
  0x41   : > { %s1307_s24 = scalar_lea.vmem %s1393_s6, %s716_s13 }
  0x42   : > { %p718_p1 = scmp.ne.s32.totalorder %s1425_s2, 0 }
  0x43   : > { %s1426_s10 = sld [smem:[#allocation22_spill]] (!%p718_p1) }
  0x44   : > { %349 = sbr.rel (%p718_p1) target bundleno = 223 (0xdf), region = 52 }
  0x49   : > { %v777_v0 = vld [vmem:[#allocation5 + $0x18] sm:$0xff]  ;;  %v776_v1 = vld [vmem:[#allocation5 + $0x10] sm:$0xff]  ;;  %v775_v2 = vld [vmem:[#allocation5 + $0x8] sm:$0xff]  ;;  %vm387_vm0 = vcmask 523264   ;;  %vm407_vm1 = vcmask 7168   ;;  %v1107_v6 = vmov 0.0  }
  0x4a   : > { %395 = vmatpush.bf16.msra.mxu0 %v777_v0  ;;  %v774_v3 = vld [vmem:[#allocation5] sm:$0xff]  ;;  %v350_v4 = vld [vmem:[%s336_s9] sm:$0xf]  ;;  %v1106_v5 = vmov -1e+30   ;;  %409 = vst.msk [vmem:[#allocation3] sm:$0xff] %vm407_vm1, %v1107_v6 }
  0x4b   : > { %408 = vst.msk [vmem:[#allocation2] sm:$0xff] %vm407_vm1, %v1106_v5  ;;  %v905_v7 = vld [vmem:[%s1426_s10] ss:$0 sm:$0xff] }
  0x4c   : > { %410 = vst.msk [vmem:[#allocation4] sm:$0xff] %vm407_vm1, %v1107_v6 }
  0x4e   : > { %396 = vmatpush.bf16.msra.mxu0 %v776_v1 }
  0x52   : > { %397 = vmatpush.bf16.msra.mxu0 %v775_v2 }
  0x56   : > { %398 = vmatpush.bf16.msra.mxu0 %v774_v3 }
  0x59   : > { %735 = vmatmul.msk.bf16.vlgmr.msra.gmra.mxu0 %vm387_vm0, %v350_v4 }
  0xd6   : > { %v400_v8 = vpop.f32.mrf.mxu0 }
  0xd7   : > { %v401_v9 = vadd.f32 %v905_v7, %v400_v8 }
  0xd9   : > { %v404_v10 = vmax.f32 %v401_v9, 0.0 }
  0xdb   : > { %v405_v11 = vpack.c.bf16 %v404_v10, %v404_v10 }
  0xdd   : > { %406 = vst [vmem:[%s1309_s1] sm:$0xf] %v405_v11 }
  0xde   : > { %v402_v12 = vpop.f32.mrf.mxu0 }
  0xdf PF: > { %v785_v13 = vld [vmem:[%s1285_s21 + $0x38] sm:$0xff]  ;;  %v784_v14 = vld [vmem:[%s1285_s21 + $0x30] sm:$0xff]  ;;  %v1108_v15 = vmov 0   ;;  %v518_v16 = vld [vmem:[%s1302_s12] sm:$0xff]  ;;  %s1427_s11 = sld [smem:[#allocation15_spill]]  ;;  %v489_v24 = vlaneseq  ;;  %vm514_vm3 = vcmask 7168  }
  0xe0   : > { %476 = vmatpush.bf16.msra.mxu0 %v785_v13  ;;  %907 = vset.pattern.permute.xlu1 %v1108_v15  ;;  %v783_v17 = vld [vmem:[%s1285_s21 + $0x28] sm:$0xff]  ;;  %v782_v18 = vld [vmem:[%s1285_s21 + $0x20] sm:$0xff]  ;;  %v781_v19 = vld [vmem:[%s1285_s21 + $0x18] sm:$0xff] }
  0xe1   : > { %906 = vset.pattern.permute.xlu0 %v1108_v15  ;;  %520 = vperm.xlu1 %907, %v518_v16   ;;  %v780_v20 = vld [vmem:[%s1285_s21 + $0x10] sm:$0xff]  ;;  %v779_v21 = vld [vmem:[%s1285_s21 + $0x8] sm:$0xff]  ;;  %v778_v22 = vld [vmem:[%s1285_s21] sm:$0xff]  ;;  %v490_v25 = vand.u32 127, %v489_v24 }
  0xe2   : > { %v494_v32 = vld [vmem:[#allocation2] sm:$0xff]  ;;  %v517_v33 = vld [vmem:[#allocation4] sm:$0xff]  ;;  %v501_v45 = vld [vmem:[#allocation3] sm:$0xff] }
  0xe4   : > { %477 = vmatpush.bf16.msra.mxu0 %v784_v14  ;;  %v411_v23 = vld [vmem:[%s1309_s1] sm:$0xf] }
  0xe5   : > { %s768_s13 = sshll.u32 %s1427_s11, 7  ;;  %p769_p3 = scmp.ne.s32.totalorder %s1427_s11, 1 }
  0xe6   : > { %v492_v26 = vstv %s768_s13 }
  0xe7   : > { %v493_v27 = vadd.s32 %v492_v26, %v490_v25 }
  0xe8   : > { %478 = vmatpush.bf16.msra.mxu0 %v783_v17 }
  0xec   : > { %479 = vmatpush.bf16.msra.mxu0 %v782_v18 }
  0xf0   : > { %480 = vmatpush.bf16.msra.mxu0 %v781_v19 }
  0xf4   : > { %481 = vmatpush.bf16.msra.mxu0 %v780_v20 }
  0xf8   : > { %482 = vmatpush.bf16.msra.mxu0 %v779_v21 }
  0xfc   : > { %483 = vmatpush.bf16.msra.mxu0 %v778_v22 }
  0xff   : > { %484 = vmatmul.bf16.vlgmr.msra.gmra.mxu0 %v411_v23 }
 0x153   : > { %v521_v28 = vpop.permute.xlu1 %520 }
 0x154   : > { %vm522_vm2 = vcmp.eq.s32.totalorder %v493_v27, %v521_v28 }
 0x17c   : > { %v485_v29 = vpop.f32.mrf.mxu0 }
 0x17d   : > { %495 = vmax.xlane.f32.xlu0 %v485_v29  ;;  %v523_v30 = vsel %vm522_vm2, %v485_v29, 0.0 }
 0x17e   : > { %524 = vadd.xlane.f32.xlu2 %v523_v30 }
 0x184   : > { %v487_v31 = vpop.f32.mrf.mxu0 }
 0x1f0   : > { %v496_v34 = vpop.xlane.xlu0 %495 }
 0x1f1   : > { %v497_v35 = vmax.f32 %v494_v32, %v496_v34  ;;  %v525_v36 = vpop.xlane.xlu2 %524 }
 0x1f2   : > { %v526_v37 = vadd.f32 %v525_v36, %v517_v33 }
 0x1f3   : > { %v498_v38 = vsub.f32 %v494_v32, %v497_v35  ;;  %516 = vst.msk [vmem:[#allocation2] sm:$0xff] %vm514_vm3, %v497_v35  ;;  %505 = vperm.xlu0 %906, %v497_v35  }
 0x1f4   : > { %527 = vst.msk [vmem:[#allocation4] sm:$0xff] %vm514_vm3, %v526_v37 }
 0x1f5   : > { %v499_v43 = vmul.f32 1.442695, %v498_v38 }
 0x265   : > { %v506_v39 = vpop.permute.xlu0 %505 }
 0x266   : > { %v508_v40 = vsub.f32 %v485_v29, %v506_v39 }
 0x268   : > { %v509_v41 = vmul.f32 1.442695, %v508_v40 }
 0x26a   : > { %908 = vpow2.f32 %v509_v41 }
 0x26b   : > { %910 = vpow2.f32 %v499_v43 }
 0x270   : > { %v909_v42 = vpop.eup %908 }
 0x271   : > { %511 = vadd.xlane.f32.xlu1 %v909_v42  ;;  %v911_v44 = vpop.eup %910 }
 0x272   : > { %v502_v46 = vmul.f32 %v911_v44, %v501_v45 }
 0x2e3   : > { %531 = sbr.rel (%p769_p3) target bundleno = 765 (0x2fd), region = 56 }
 0x2e4   : > { %v512_v47 = vpop.xlane.xlu1 %511 }
 0x2e5   : > { %v513_v48 = vadd.f32 %v512_v47, %v502_v46 }
 0x2e7   : > { %515 = vst.msk [vmem:[#allocation3] sm:$0xff] %vm514_vm3, %v513_v48 }
 0x2e8   : > { %v532_v51 = vld [vmem:[#allocation2] sm:$0xff]  ;;  %v537_v53 = vld [vmem:[#allocation4] sm:$0xff] }
 0x2ee   : > { %v533_v49 = vld [vmem:[#allocation3] sm:$0xff] }
 0x2ef   : > { %912 = vlog2.f32 %v533_v49 }
 0x2f5   : > { %v913_v50 = vpop.eup %912 }
 0x2f6   : > { %v535_v52 = vmul.f32 0.6931472, %v913_v50 }
 0x2f8   : > { %v536_v54 = vadd.f32 %v535_v52, %v532_v51 }
 0x2fa   : > { %v538_v55 = vsub.f32 %v536_v54, %v537_v53 }
 0x2fc   : > { %539 = vst.msk [vmem:[%s1307_s24] sm:$0xff] %vm514_vm3, %v538_v55 }
 0x2fd PF: > { %s771_s18 = sshll.u32 %s1088_s28, 2  ;;  %s1429_s15 = sld [smem:[#allocation23_spill]] }
 0x2fe   : > { %s557_s12 = sshll.u32 %s1309_s1, 4  ;;  %s541_s16 = scalar_lea.sflag [#allocation7], %s324_s27  ;;  %s558_s12 = int_to_ptr.vmem [resolvable:$true] %s557_s12 }
 0x303   : > { %s555_s17 = scalar_lea.hbm %s1429_s15, %s771_s18  ;;  %s994_s28 = scalar_lea.hbm %s1429_s15, 8 }
 0x304   : > { %s559_s19 = sshll.u32 %s555_s17, 4  ;;  %s560_s19 = int_to_ptr.hbm [resolvable:$true] %s559_s19 }
 0x305   : > { %s988_s2 = sshra.s32 %s560_s19, 4  ;;  %s989_s2 = int_to_ptr.hbm [resolvable:$true] %s988_s2 }
 0x306   : > { %s990_s5 = scalar_lea.hbm %s989_s2, 4  ;;  %p995_p5 = scmp.lt.s32.totalorder %s989_s2, %s1429_s15 }
 0x307   : > { %p991_p0 = scmp.ne.s32.totalorder %s989_s2, %s990_s5  ;;  %p996_p6 = scmp.lt.s32.totalorder %s994_s28, %s990_s5 }
 0x309   : > { %p992_p2 = pnand %p991_p0, %p1215_p7  ;;  %p997_p8 = por %p996_p6, %p995_p5 }
 0x30b   : > { %p993_p4 = pneg %p992_p2 }
 0x30d   : > { %p998_p10 = pnand %p997_p8, %p993_p4 }
 0x30f   : > { %1001 = shalt.err (!%p998_p10)
}
 0x310   : > { %792 = dma.vmem_to_hbm [thread:$0]  (%p1215_p7), %s558_s12, 64, %s560_s19, %s541_s16  }
 0x311 PF: > { %s1430_s27 = sld [smem:[#allocation14_spill]]  ;;  %p809_p12 = scmp.ge.s32.totalorder %s1100_s7, 2 }
 0x313   : > { %p803_p13 = pnand %p809_p12, %p1220_p9 }
 0x315   : > { %p804_p11 = pneg %p803_p13 }
 0x317   : > { %s574_s13 = sand.u32 1, %s1430_s27  }
 0x318   : > { %s575_s18 = scalar_lea.sflag [#allocation7], %s574_s13 }
 0x319   : > { %1055 = dma.done.wait (%p804_p11), %s575_s18, 64  }
 0x31a   : > { %1057 = vsyncadd (%p804_p11), %s575_s18, 4294967232  ;;  %s24_s7 = sadd.s32 1, %s1100_s7   ;;  %s1432_s28 = sld [smem:[#allocation16_spill]] }
 0x31b   : > { %p21_p1 = scmp.ge.s32.totalorder %s24_s7, 6   ;;  %s1433_s8 = sld [smem:[#allocation19_spill]] }
 0x31c   : > { %s1434_s30 = sld [smem:[#allocation20_spill]]  ;;  %s1435_s21 = smov %s1064_s22 }
 0x31d   : > { %s1436_s22 = smov %s1068_s23  ;;  %s1437_s23 = smov %s1267_s14 }
 0x31e   : > { %s1438_s24 = smov %s1076_s25  ;;  %s1439_s25 = smov %s1080_s26 }
 0x31f   : > { %s1440_s26 = smov %s1258_s20  ;;  %s1441_s27 = smov %s1092_s29 }
 0x320   :  { %23 = sbr.rel (!%p21_p1) target bundleno = 14 (0xe), region = 116 }
 0x321   : > { %s1442_s29 = smov %s1433_s8 }
 0x325   :  { %588 = vsyncpa [#allocation6], 1 }
 0x326   :  { %590 = vsyncpa [#allocation6 + $0x1], 1 }
 0x327   :  { %591 = vsyncpa [#allocation9], 1 }
 0x328   :  { %593 = vsyncpa [#allocation9 + $0x1], 1 }
 0x329   :  { %594 = vsyncpa [#allocation7], 1 }
 0x32a   :  { %596 = vsyncpa [#allocation7 + $0x1], 1 }

</bundles_post_ra>
